<compile_context>
chip_gen: v5e
topology: v5e:2x2
jax: 0.10.0
libtpu: 0.0.40
codegen_flags: <defaults>
</compile_context>

<pallas_src>
import math
from functools import partial

import jax
import jax.numpy as jnp
from jax.experimental import pallas as pl
from jax.experimental.pallas import tpu as pltpu

# ----- configuration (small shapes consistent with the module) -----
Z_DIM = 16
ACT_DIM = 4
HID_DIM = 32
NUM_LAYER = 2
IN_DIM = Z_DIM + ACT_DIM           # 20

PAD = 128                          # lane-padded width of every matrix / activation
BLOCK_STRIDE = PAD + 8             # [W (128 rows) | bias block (8 rows, bias in row 0)]
N_LINEAR = NUM_LAYER + 1           # hidden layers + post
SLAB_ROWS = N_LINEAR * BLOCK_STRIDE  # 408 (8-aligned)
MAX_TILE_M = 128                   # batch tile per grid step


def _critic_kernel(num_layer, x_ref, p_ref, o_ref):
    """x_ref: [TM, 128] f32 padded input tile; p_ref: [SLAB_ROWS, 128] bf16
    packed params (VMEM-resident across the grid); o_ref: [TM, 128] f32
    (q value in column 0)."""
    h = x_ref[...]                                     # [TM, 128] f32
    for li in range(num_layer + 1):                    # static unroll (3 layers)
        base = li * BLOCK_STRIDE                       # static, 8-aligned
        w = p_ref[base:base + PAD, :]                  # [128, 128] bf16
        b = p_ref[base + PAD:base + PAD + 1, :]        # [1, 128]   bf16
        h = jnp.dot(h.astype(jnp.bfloat16), w,
                    preferred_element_type=jnp.float32)   # MXU, f32 accumulate
        h = h + b.astype(jnp.float32)
        if li < num_layer:                             # ReLU on hidden layers only
            h = jnp.maximum(h, 0.0)
    o_ref[...] = h                                     # lane-dense, unmasked store


def init_params(key):
    """Synthetic fan-in uniform init (the module's `initialize_weight` source is
    not provided). Returns list of (w [in,out], b [out]) in float32."""
    # TODO(synk): replace with the real `initialize_weight` scheme if needed.
    dims = [IN_DIM] + [HID_DIM] * NUM_LAYER + [1]
    layers = []
    for i in range(len(dims) - 1):
        key, kw, kb = jax.random.split(key, 3)
        scale = 1.0 / math.sqrt(dims[i])
        w = jax.random.uniform(kw, (dims[i], dims[i + 1]), jnp.float32, -scale, scale)
        b = jax.random.uniform(kb, (dims[i + 1],), jnp.float32, -scale, scale)
        layers.append((w, b))
    return layers


def pack_params(layers):
    """Pack all weights/biases into one zero-padded bf16 slab [SLAB_ROWS, 128]."""
    blocks = []
    for w, b in layers:
        wp = jnp.zeros((PAD, PAD), jnp.float32).at[: w.shape[0], : w.shape[1]].set(w)
        bp = jnp.zeros((8, PAD), jnp.float32).at[0, : b.shape[0]].set(b)
        blocks += [wp, bp]
    packed = jnp.concatenate(blocks, axis=0).astype(jnp.bfloat16)
    assert packed.shape == (SLAB_ROWS, PAD)
    return packed


@jax.jit
def critic_forward(z, action, packed):
    batch = z.shape[0]
    x = jnp.concatenate([z, action], axis=-1).astype(jnp.float32)    # [B, 20]

    # Pad batch to a multiple of 8 (f32 sublane tile) and pick the batch tile.
    b_pad8 = -(-batch // 8) * 8
    tm = min(MAX_TILE_M, b_pad8)
    b_pad = -(-b_pad8 // tm) * tm
    x_pad = jnp.zeros((b_pad, PAD), jnp.float32).at[:batch, :IN_DIM].set(x)

    grid = (b_pad // tm,)
    q_pad = pl.pallas_call(
        partial(_critic_kernel, NUM_LAYER),
        out_shape=jax.ShapeDtypeStruct((b_pad, PAD), jnp.float32),
        grid=grid,
        in_specs=[
            pl.BlockSpec((tm, PAD), lambda i: (i, 0)),          # batch tiles
            pl.BlockSpec((SLAB_ROWS, PAD), lambda i: (0, 0)),   # resident param slab
        ],
        out_specs=pl.BlockSpec((tm, PAD), lambda i: (i, 0)),
        compiler_params=pltpu.CompilerParams(
            dimension_semantics=("parallel",)),                 # split across TCs (v7x)
    )(x_pad, packed)
    return q_pad[:batch, :1]                                    # [B, 1]


def critic_ref(z, action, layers):
    """Pure-JAX f32 reference of the torch module's forward."""
    h = jnp.concatenate([z, action], axis=-1)
    for i, (w, b) in enumerate(layers):
        h = h @ w + b
        if i < len(layers) - 1:
            h = jnp.maximum(h, 0.0)
    return h


if __name__ == "__main__":
    key = jax.random.PRNGKey(0)
    k_z, k_a, k_p = jax.random.split(key, 3)

    layers = init_params(k_p)
    packed = pack_params(layers)

    # Replay-buffer-sized batch: exercises the batched grid (2 tiles of 128).
    BATCH = 256
    z = jax.random.normal(k_z, (BATCH, Z_DIM), jnp.float32)
    action = jax.random.normal(k_a, (BATCH, ACT_DIM), jnp.float32)

    q = critic_forward(z, action, packed)
    jax.block_until_ready(q)
    assert q.shape == (BATCH, 1)
    q_ref = critic_ref(z, action, layers)
    assert jnp.allclose(q, q_ref, atol=1e-2, rtol=1e-2)

    # Small-batch path (pad-to-8, single grid step).
    q_small = critic_forward(z[:8], action[:8], packed)
    jax.block_until_ready(q_small)
    assert q_small.shape == (8, 1)
    assert jnp.allclose(q_small, q_ref[:8], atol=1e-2, rtol=1e-2)

    print("KERNEL_OK")
</pallas_src>

<mosaic_0001>
module attributes {stable_mosaic.version = 11 : i64} {
  func.func @_critic_kernel(%arg0: i32, %arg1: memref<128x128xf32, #tpu.memory_space<vmem>>, %arg2: memref<408x128xbf16, #tpu.memory_space<vmem>>, %arg3: memref<128x128xf32, #tpu.memory_space<vmem>>) attributes {dimension_semantics = [#tpu.dimension_semantics<parallel>], iteration_bounds = array<i64: 2>, scalar_prefetch = 0 : i64, scratch_operands = 0 : i64, tpu.core_type = #tpu.core_type<tc>, window_params = [{transform_indices = @transform_0, window_bounds = array<i64: 128, 128>}, {pipeline_mode = #tpu.pipeline_mode<synchronous>, transform_indices = @transform_1, window_bounds = array<i64: 408, 128>}, {transform_indices = @transform_2, window_bounds = array<i64: 128, 128>}]} {
    %c0 = arith.constant 0 : index
    %c0_0 = arith.constant 0 : index
    %0 = vector.load %arg1[%c0, %c0_0] : memref<128x128xf32, #tpu.memory_space<vmem>>, vector<128x128xf32>
    %c0_1 = arith.constant 0 : index
    %c0_2 = arith.constant 0 : index
    %1 = vector.load %arg2[%c0_1, %c0_2] : memref<408x128xbf16, #tpu.memory_space<vmem>>, vector<128x128xbf16>
    %c128 = arith.constant 128 : index
    %c0_3 = arith.constant 0 : index
    %2 = vector.load %arg2[%c128, %c0_3] : memref<408x128xbf16, #tpu.memory_space<vmem>>, vector<1x128xbf16>
    %3 = arith.truncf %0 : vector<128x128xf32> to vector<128x128xbf16>
    %cst = arith.constant dense<0.000000e+00> : vector<128x128xf32>
    %4 = tpu.matmul %3, %1, %cst {dimension_numbers = #tpu.dot_dimension_numbers<[1], [0], [0], [1], [0, 0, 1, 1], [], []>} : vector<128x128xbf16>, vector<128x128xbf16>, vector<128x128xf32> -> vector<128x128xf32>
    %5 = arith.extf %2 : vector<1x128xbf16> to vector<1x128xf32>
    %6 = vector.broadcast %5 : vector<1x128xf32> to vector<128x128xf32>
    %7 = arith.addf %4, %6 : vector<128x128xf32>
    %cst_4 = arith.constant 0.000000e+00 : f32
    %8 = vector.broadcast %cst_4 : f32 to vector<128x128xf32>
    %9 = arith.maximumf %7, %8 : vector<128x128xf32>
    %c136 = arith.constant 136 : index
    %c0_5 = arith.constant 0 : index
    %10 = vector.load %arg2[%c136, %c0_5] : memref<408x128xbf16, #tpu.memory_space<vmem>>, vector<128x128xbf16>
    %c264 = arith.constant 264 : index
    %c0_6 = arith.constant 0 : index
    %11 = vector.load %arg2[%c264, %c0_6] : memref<408x128xbf16, #tpu.memory_space<vmem>>, vector<1x128xbf16>
    %12 = arith.truncf %9 : vector<128x128xf32> to vector<128x128xbf16>
    %cst_7 = arith.constant dense<0.000000e+00> : vector<128x128xf32>
    %13 = tpu.matmul %12, %10, %cst_7 {dimension_numbers = #tpu.dot_dimension_numbers<[1], [0], [0], [1], [0, 0, 1, 1], [], []>} : vector<128x128xbf16>, vector<128x128xbf16>, vector<128x128xf32> -> vector<128x128xf32>
    %14 = arith.extf %11 : vector<1x128xbf16> to vector<1x128xf32>
    %15 = vector.broadcast %14 : vector<1x128xf32> to vector<128x128xf32>
    %16 = arith.addf %13, %15 : vector<128x128xf32>
    %cst_8 = arith.constant 0.000000e+00 : f32
    %17 = vector.broadcast %cst_8 : f32 to vector<128x128xf32>
    %18 = arith.maximumf %16, %17 : vector<128x128xf32>
    %c272 = arith.constant 272 : index
    %c0_9 = arith.constant 0 : index
    %19 = vector.load %arg2[%c272, %c0_9] : memref<408x128xbf16, #tpu.memory_space<vmem>>, vector<128x128xbf16>
    %c400 = arith.constant 400 : index
    %c0_10 = arith.constant 0 : index
    %20 = vector.load %arg2[%c400, %c0_10] : memref<408x128xbf16, #tpu.memory_space<vmem>>, vector<1x128xbf16>
    %21 = arith.truncf %18 : vector<128x128xf32> to vector<128x128xbf16>
    %cst_11 = arith.constant dense<0.000000e+00> : vector<128x128xf32>
    %22 = tpu.matmul %21, %19, %cst_11 {dimension_numbers = #tpu.dot_dimension_numbers<[1], [0], [0], [1], [0, 0, 1, 1], [], []>} : vector<128x128xbf16>, vector<128x128xbf16>, vector<128x128xf32> -> vector<128x128xf32>
    %23 = arith.extf %20 : vector<1x128xbf16> to vector<1x128xf32>
    %24 = vector.broadcast %23 : vector<1x128xf32> to vector<128x128xf32>
    %25 = arith.addf %22, %24 : vector<128x128xf32>
    %c0_12 = arith.constant 0 : index
    %c0_13 = arith.constant 0 : index
    %26 = vector.load %arg3[%c0_12, %c0_13] : memref<128x128xf32, #tpu.memory_space<vmem>>, vector<128x128xf32>
    tpu.vector_store %arg3[%c0_12, %c0_13], %25 {strides = array<i32>} : memref<128x128xf32, #tpu.memory_space<vmem>>, vector<128x128xf32>,
    return
  }
  func.func @transform_0(%arg0: i32) -> (i32, i32) {
    %c0_i32 = arith.constant 0 : i32
    %c0_i32_0 = arith.constant 0 : i32
    return %arg0, %c0_i32 : i32, i32
  }
  func.func @transform_1(%arg0: i32) -> (i32, i32) {
    %c0_i32 = arith.constant 0 : i32
    %c0_i32_0 = arith.constant 0 : i32
    %c0_i32_1 = arith.constant 0 : i32
    return %c0_i32, %c0_i32_0 : i32, i32
  }
  func.func @transform_2(%arg0: i32) -> (i32, i32) {
    %c0_i32 = arith.constant 0 : i32
    %c0_i32_0 = arith.constant 0 : i32
    return %arg0, %c0_i32 : i32, i32
  }
}

</mosaic_0001>

<bundles_post_ra>
// kernel: critic_forward.1
= control target key start
LH: loop header
LB: loop body
LE: loop exit
PB: predicated region body
PF: predicated region fallthrough
CT: control target
= control target key end

     0   :  { %s825_s9 = smov 0   ;;  %s984_s0 = inlined_call_operand.vmem [shape: f32[256,128], index: 0, kind: input, shape index: {}]   ;;  %s985_s1 = inlined_call_operand.vmem [shape: bf16[408,128], index: 1, kind: input, shape index: {}]   ;;  %s986_s2 = inlined_call_operand.vmem [shape: f32[256,128], index: 2, kind: output, shape index: {}]  }
   0x1 LB: > { %s639_s10 = sadd.s32 4294967295, %s808_s9   ;;  %p643_p0 = scmp.ge.s32.totalorder %s808_s9, 1  ;;  %s808_s9 = sphi %s825_s9, %s12_s9  }
   0x2   : > { %p113_p1 = scmp.lt.s32.totalorder %s808_s9, 3 }
   0x4   : > { %p114_p2 = pnand %p643_p0, %p113_p1 }
   0x5   : > { %s644_s17 = sshll.u32 (!%p114_p2), %s639_s10, 4 }
   0x6   : > { %117 = sbr.rel (%p114_p2) target bundleno = 546 (0x222), region = 28  ;;  %p136_p3 = scmp.lt.s32.totalorder (!%p114_p2), %s644_s17, 31 }
   0xb   : > { %v753_v0 = vld [vmem:[%s985_s1 + $0x38] sm:$0xff]  ;;  %v752_v1 = vld [vmem:[%s985_s1 + $0x30] sm:$0xff]  ;;  %v751_v2 = vld [vmem:[%s985_s1 + $0x28] sm:$0xff]  ;;  %s988_s17 = smov (!%p136_p3, %s644_s17), 31 }
   0xc   : > { %238 = vmatpush.bf16.msra.mxu0 %v753_v0  ;;  %770 = vmatpush.bf16.msra.mxu3 %v753_v0  ;;  %v750_v3 = vld [vmem:[%s985_s1 + $0x20] sm:$0xff]  ;;  %v749_v4 = vld [vmem:[%s985_s1 + $0x18] sm:$0xff]  ;;  %v748_v5 = vld [vmem:[%s985_s1 + $0x10] sm:$0xff]  ;;  %s645_s24 = sshll.u32 %s988_s17, 3 }
   0xd   : > { %v747_v6 = vld [vmem:[%s985_s1 + $0x8] sm:$0xff]  ;;  %s862_s29 = scalar_lea.vmem %s984_s0, %s645_s24  ;;  %v746_v7 = vld [vmem:[%s985_s1] sm:$0xff]  ;;  %v760_v27 = vld [vmem:[%s985_s1 + $0x74] sm:$0xff]  ;;  %s963_s21 = scalar_lea.vmem %s986_s2, %s645_s24 }
   0xe   : > { %v147_v8 = vld [vmem:[%s862_s29] sm:$0xff]  ;;  %v148_v9 = vld [vmem:[%s862_s29 + $0x8] sm:$0xff]  ;;  %v149_v14 = vld [vmem:[%s862_s29 + $0x10] sm:$0xff] }
   0xf   : > { %v159_v10 = vld [vmem:[%s862_s29 + $0x60] sm:$0xff]  ;;  %v160_v11 = vld [vmem:[%s862_s29 + $0x68] sm:$0xff]  ;;  %v180_v12 = vpack.c.bf16 %v148_v9, %v147_v8  ;;  %v150_v15 = vld [vmem:[%s862_s29 + $0x18] sm:$0xff] }
  0x10   : > { %239 = vmatpush.bf16.msra.mxu0 %v752_v1  ;;  %771 = vmatpush.bf16.msra.mxu3 %v752_v1  ;;  %v186_v13 = vpack.c.bf16 %v160_v11, %v159_v10  ;;  %v161_v16 = vld [vmem:[%s862_s29 + $0x70] sm:$0xff]  ;;  %v162_v17 = vld [vmem:[%s862_s29 + $0x78] sm:$0xff]  ;;  %v181_v18 = vpack.c.bf16 %v150_v15, %v149_v14  ;;  %v151_v20 = vld [vmem:[%s862_s29 + $0x20] sm:$0xff] }
  0x11   : > { %v187_v19 = vpack.c.bf16 %v162_v17, %v161_v16  ;;  %v152_v21 = vld [vmem:[%s862_s29 + $0x28] sm:$0xff]  ;;  %v153_v23 = vld [vmem:[%s862_s29 + $0x30] sm:$0xff]  ;;  %v154_v24 = vld [vmem:[%s862_s29 + $0x38] sm:$0xff] }
  0x12   : > { %v182_v22 = vpack.c.bf16 %v152_v21, %v151_v20  ;;  %v183_v25 = vpack.c.bf16 %v154_v24, %v153_v23  ;;  %v761_v26 = vld [vmem:[%s985_s1 + $0x7c] sm:$0xff]  ;;  %v759_v28 = vld [vmem:[%s985_s1 + $0x6c] sm:$0xff]  ;;  %v758_v31 = vld [vmem:[%s985_s1 + $0x64] sm:$0xff] }
  0x13   : > { %378 = vmatpush.bf16.msra.mxu1 %v761_v26  ;;  %v155_v29 = vld [vmem:[%s862_s29 + $0x40] sm:$0xff]  ;;  %v156_v30 = vld [vmem:[%s862_s29 + $0x48] sm:$0xff]  ;;  %v157_v33 = vld [vmem:[%s862_s29 + $0x50] sm:$0xff] }
  0x14   : > { %240 = vmatpush.bf16.msra.mxu0 %v751_v2  ;;  %772 = vmatpush.bf16.msra.mxu3 %v751_v2  ;;  %v184_v32 = vpack.c.bf16 %v156_v30, %v155_v29  ;;  %v158_v34 = vld [vmem:[%s862_s29 + $0x58] sm:$0xff]  ;;  %v755_v38 = vld [vmem:[%s985_s1 + $0x4c] sm:$0xff]  ;;  %v754_v39 = vld [vmem:[%s985_s1 + $0x44] sm:$0xff] }
  0x15   : > { %v185_v35 = vpack.c.bf16 %v158_v34, %v157_v33  ;;  %v757_v36 = vld [vmem:[%s985_s1 + $0x5c] sm:$0xff]  ;;  %v756_v37 = vld [vmem:[%s985_s1 + $0x54] sm:$0xff] }
  0x16   : > { %v179_v40 = vld [vmem:[%s985_s1 + $0x40] sm:$0x1]  ;;  %v768_v23 = vld [vmem:[%s985_s1 + $0xb8] sm:$0xff]  ;;  %v767_v24 = vld [vmem:[%s985_s1 + $0xb0] sm:$0xff] }
  0x17   : > { %379 = vmatpush.bf16.msra.mxu1 %v760_v27  ;;  %v188_v41 = vunpack.c.l.bf16 %v179_v40  ;;  %v769_v21 = vld [vmem:[%s985_s1 + $0xc0] sm:$0xff]  ;;  %v764_v40 = vld [vmem:[%s985_s1 + $0x98] sm:$0xff] }
  0x18   : > { %241 = vmatpush.bf16.msra.mxu0 %v750_v3  ;;  %773 = vmatpush.bf16.msra.mxu3 %v750_v3 }
  0x19   : > { %v910_v43 = vperm.slane %v188_v41, 0  ;;  %518 = vmatpush.bf16.msra.mxu2 %v769_v21  ;;  %v763_v41 = vld [vmem:[%s985_s1 + $0x90] sm:$0xff] }
  0x1b   : > { %380 = vmatpush.bf16.msra.mxu1 %v759_v28 }
  0x1c   : > { %242 = vmatpush.bf16.msra.mxu0 %v749_v4  ;;  %774 = vmatpush.bf16.msra.mxu3 %v749_v4 }
  0x1d   : > { %519 = vmatpush.bf16.msra.mxu2 %v768_v23 }
  0x1f   : > { %381 = vmatpush.bf16.msra.mxu1 %v758_v31 }
  0x20   : > { %243 = vmatpush.bf16.msra.mxu0 %v748_v5  ;;  %775 = vmatpush.bf16.msra.mxu3 %v748_v5 }
  0x21   : > { %520 = vmatpush.bf16.msra.mxu2 %v767_v24 }
  0x23   : > { %382 = vmatpush.bf16.msra.mxu1 %v757_v36 }
  0x24   : > { %244 = vmatpush.bf16.msra.mxu0 %v747_v6  ;;  %776 = vmatpush.bf16.msra.mxu3 %v747_v6 }
  0x27   : > { %383 = vmatpush.bf16.msra.mxu1 %v756_v37 }
  0x28   : > { %245 = vmatpush.bf16.msra.mxu0 %v746_v7  ;;  %777 = vmatpush.bf16.msra.mxu3 %v746_v7 }
  0x2b   : > { %246 = vmatmul.bf16.vlgmr.msra.gmra.mxu0 %v180_v12  ;;  %276 = vmatmul.bf16.vlgmr.msra.gmra.mxu3 %v186_v13 }
  0x2c   : > { %778 = vmatpush.bf16.msrb.mxu3 %v761_v26  ;;  %384 = vmatpush.bf16.msra.mxu1 %v755_v38 }
  0x30   : > { %779 = vmatpush.bf16.msrb.mxu3 %v760_v27  ;;  %385 = vmatpush.bf16.msra.mxu1 %v754_v39 }
  0x34   : > { %780 = vmatpush.bf16.msrb.mxu3 %v759_v28  ;;  %v766_v28 = vld [vmem:[%s985_s1 + $0xa8] sm:$0xff] }
  0x35   : > { %521 = vmatpush.bf16.msra.mxu2 %v766_v28 }
  0x38   : > { %781 = vmatpush.bf16.msrb.mxu3 %v758_v31 }
  0x3b   : > { %251 = vmatmul.bf16.gmra.mxu0 %v181_v18  ;;  %281 = vmatmul.bf16.gmra.mxu3 %v187_v19 }
  0x3c   : > { %782 = vmatpush.bf16.msrb.mxu3 %v757_v36 }
  0x40   : > { %783 = vmatpush.bf16.msrb.mxu3 %v756_v37 }
  0x44   : > { %784 = vmatpush.bf16.msrb.mxu3 %v755_v38 }
  0x48   : > { %785 = vmatpush.bf16.msrb.mxu3 %v754_v39  ;;  %v765_v39 = vld [vmem:[%s985_s1 + $0xa0] sm:$0xff] }
  0x49   : > { %522 = vmatpush.bf16.msra.mxu2 %v765_v39 }
  0x4b   : > { %256 = vmatmul.bf16.gmra.mxu0 %v182_v22 }
  0x4c   : > { %786 = vmatpush.bf16.msra.mxu3 %v769_v21 }
  0x4d   : > { %523 = vmatpush.bf16.msra.mxu2 %v764_v40 }
  0x50   : > { %787 = vmatpush.bf16.msra.mxu3 %v768_v23 }
  0x51   : > { %524 = vmatpush.bf16.msra.mxu2 %v763_v41 }
  0x54   : > { %788 = vmatpush.bf16.msra.mxu3 %v767_v24 }
  0x58   : > { %789 = vmatpush.bf16.msra.mxu3 %v766_v28 }
  0x5b   : > { %261 = vmatmul.bf16.gmra.mxu0 %v183_v25 }
  0x5c   : > { %790 = vmatpush.bf16.msra.mxu3 %v765_v39 }
  0x60   : > { %791 = vmatpush.bf16.msra.mxu3 %v764_v40 }
  0x64   : > { %792 = vmatpush.bf16.msra.mxu3 %v763_v41 }
  0x6b   : > { %266 = vmatmul.bf16.gmra.mxu0 %v184_v32 }
  0x7b   : > { %271 = vmatmul.bf16.gmra.mxu0 %v185_v35 }
  0xa8   : > { %v247_v42 = vpop.f32.mrf.mxu0 }
  0xa9   : > { %v248_v45 = vadd.f32 %v247_v42, %v910_v43  ;;  %v762_v42 = vld [vmem:[%s985_s1 + $0x88] sm:$0xff] }
  0xaa   : > { %525 = vmatpush.bf16.msra.mxu2 %v762_v42  ;;  %793 = vmatpush.bf16.msra.mxu3 %v762_v42 }
  0xab   : > { %v287_v48 = vmax.f32 %v248_v45, 0.0 }
  0xae   : > { %v277_v44 = vpop.f32.mrf.mxu3 }
  0xaf   : > { %v278_v50 = vadd.f32 %v277_v44, %v910_v43 }
  0xb0   : > { %v249_v46 = vpop.f32.mrf.mxu0 }
  0xb1   : > { %v250_v47 = vadd.f32 %v249_v46, %v910_v43  ;;  %v299_v53 = vmax.f32 %v278_v50, 0.0 }
  0xb3   : > { %v288_v49 = vmax.f32 %v250_v47, 0.0 }
  0xb5   : > { %v320_v51 = vpack.c.bf16 %v288_v49, %v287_v48 }
  0xb6   : > { %v279_v52 = vpop.f32.mrf.mxu3 }
  0xb7   : > { %386 = vmatmul.bf16.vlgmr.msra.gmra.mxu1 %v320_v51  ;;  %v280_v54 = vadd.f32 %v279_v52, %v910_v43 }
  0xb8   : > { %v252_v55 = vpop.f32.mrf.mxu0 }
  0xb9   : > { %v300_v56 = vmax.f32 %v280_v54, 0.0  ;;  %v253_v59 = vadd.f32 %v252_v55, %v910_v43 }
  0xbb   : > { %v326_v57 = vpack.c.bf16 %v300_v56, %v299_v53  ;;  %v289_v62 = vmax.f32 %v253_v59, 0.0 }
  0xbd   : > { %416 = vmatmul.bf16.vlgmr.msrb.gmra.mxu3 %v326_v57 }
  0xbe   : > { %v282_v58 = vpop.f32.mrf.mxu3 }
  0xbf   : > { %v283_v0 = vadd.f32 %v282_v58, %v910_v43 }
  0xc0   : > { %v254_v60 = vpop.f32.mrf.mxu0 }
  0xc1   : > { %v255_v61 = vadd.f32 %v254_v60, %v910_v43  ;;  %v301_v3 = vmax.f32 %v283_v0, 0.0 }
  0xc3   : > { %v290_v63 = vmax.f32 %v255_v61, 0.0 }
  0xc5   : > { %v321_v1 = vpack.c.bf16 %v290_v63, %v289_v62 }
  0xc6   : > { %v284_v2 = vpop.f32.mrf.mxu3 }
  0xc7   : > { %391 = vmatmul.bf16.gmra.mxu1 %v321_v1  ;;  %v285_v4 = vadd.f32 %v284_v2, %v910_v43 }
  0xc8   : > { %v257_v5 = vpop.f32.mrf.mxu0 }
  0xc9   : > { %v302_v6 = vmax.f32 %v285_v4, 0.0  ;;  %v258_v8 = vadd.f32 %v257_v5, %v910_v43 }
  0xcb   : > { %v327_v7 = vpack.c.bf16 %v302_v6, %v301_v3  ;;  %v291_v11 = vmax.f32 %v258_v8, 0.0 }
  0xcd   : > { %421 = vmatmul.bf16.gmra.mxu3 %v327_v7 }
  0xd0   : > { %v259_v9 = vpop.f32.mrf.mxu0 }
  0xd1   : > { %v260_v10 = vadd.f32 %v259_v9, %v910_v43 }
  0xd3   : > { %v292_v12 = vmax.f32 %v260_v10, 0.0 }
  0xd5   : > { %v322_v13 = vpack.c.bf16 %v292_v12, %v291_v11 }
  0xd7   : > { %396 = vmatmul.bf16.gmra.mxu1 %v322_v13 }
  0xd8   : > { %v262_v14 = vpop.f32.mrf.mxu0 }
  0xd9   : > { %v263_v15 = vadd.f32 %v262_v14, %v910_v43 }
  0xdb   : > { %v293_v18 = vmax.f32 %v263_v15, 0.0 }
  0xe0   : > { %v264_v16 = vpop.f32.mrf.mxu0 }
  0xe1   : > { %v265_v17 = vadd.f32 %v264_v16, %v910_v43 }
  0xe3   : > { %v294_v19 = vmax.f32 %v265_v17, 0.0 }
  0xe5   : > { %v323_v20 = vpack.c.bf16 %v294_v19, %v293_v18 }
  0xe7   : > { %401 = vmatmul.bf16.gmra.mxu1 %v323_v20 }
  0xe8   : > { %v267_v22 = vpop.f32.mrf.mxu0 }
  0xe9   : > { %v268_v25 = vadd.f32 %v267_v22, %v910_v43 }
  0xeb   : > { %v295_v29 = vmax.f32 %v268_v25, 0.0 }
  0xf0   : > { %v269_v26 = vpop.f32.mrf.mxu0 }
  0xf1   : > { %v270_v27 = vadd.f32 %v269_v26, %v910_v43 }
  0xf3   : > { %v296_v30 = vmax.f32 %v270_v27, 0.0 }
  0xf5   : > { %v324_v31 = vpack.c.bf16 %v296_v30, %v295_v29 }
  0xf7   : > { %406 = vmatmul.bf16.gmra.mxu1 %v324_v31 }
  0xf8   : > { %v272_v32 = vpop.f32.mrf.mxu0 }
  0xf9   : > { %v273_v33 = vadd.f32 %v272_v32, %v910_v43 }
  0xfb   : > { %v297_v36 = vmax.f32 %v273_v33, 0.0 }
 0x100   : > { %v274_v34 = vpop.f32.mrf.mxu0 }
 0x101   : > { %v275_v35 = vadd.f32 %v274_v34, %v910_v43  ;;  %v319_v43 = vld [vmem:[%s985_s1 + $0x84] sm:$0x1] }
 0x102   : > { %v328_v44 = vunpack.c.l.bf16 %v319_v43 }
 0x103   : > { %v298_v37 = vmax.f32 %v275_v35, 0.0 }
 0x104   : > { %v329_v46 = vperm.slane %v328_v44, 0 }
 0x105   : > { %v325_v38 = vpack.c.bf16 %v298_v37, %v297_v36 }
 0x107   : > { %411 = vmatmul.bf16.gmra.mxu1 %v325_v38  ;;  %v459_v38 = vld [vmem:[%s985_s1 + $0xc8] sm:$0x1] }
 0x108   : > { %v468_v39 = vunpack.c.l.bf16 %v459_v38 }
 0x10a   : > { %v469_v40 = vperm.slane %v468_v39, 0 }
 0x134   : > { %v387_v45 = vpop.f32.mrf.mxu1 }
 0x135   : > { %v388_v47 = vadd.f32 %v387_v45, %v329_v46 }
 0x137   : > { %v427_v50 = vmax.f32 %v388_v47, 0.0 }
 0x13c   : > { %v389_v48 = vpop.f32.mrf.mxu1 }
 0x13d   : > { %v390_v49 = vadd.f32 %v389_v48, %v329_v46 }
 0x13f   : > { %v428_v51 = vmax.f32 %v390_v49, 0.0 }
 0x140   : > { %v417_v52 = vpop.f32.mrf.mxu3 }
 0x141   : > { %v460_v53 = vpack.c.bf16 %v428_v51, %v427_v50  ;;  %v418_v55 = vadd.f32 %v417_v52, %v329_v46 }
 0x143   : > { %526 = vmatmul.bf16.vlgmr.msra.gmra.mxu2 %v460_v53  ;;  %v439_v57 = vmax.f32 %v418_v55, 0.0 }
 0x144   : > { %v392_v54 = vpop.f32.mrf.mxu1 }
 0x145   : > { %v393_v59 = vadd.f32 %v392_v54, %v329_v46 }
 0x147   : > { %v429_v0 = vmax.f32 %v393_v59, 0.0 }
 0x148   : > { %v419_v56 = vpop.f32.mrf.mxu3 }
 0x149   : > { %v420_v58 = vadd.f32 %v419_v56, %v329_v46 }
 0x14b   : > { %v440_v60 = vmax.f32 %v420_v58, 0.0 }
 0x14c   : > { %v394_v61 = vpop.f32.mrf.mxu1 }
 0x14d   : > { %v395_v62 = vadd.f32 %v394_v61, %v329_v46  ;;  %v466_v63 = vpack.c.bf16 %v440_v60, %v439_v57 }
 0x14f   : > { %v430_v1 = vmax.f32 %v395_v62, 0.0  ;;  %556 = vmatmul.bf16.vlgmr.msra.gmra.mxu3 %v466_v63 }
 0x150   : > { %v422_v2 = vpop.f32.mrf.mxu3 }
 0x151   : > { %v461_v3 = vpack.c.bf16 %v430_v1, %v429_v0  ;;  %v423_v5 = vadd.f32 %v422_v2, %v329_v46 }
 0x153   : > { %531 = vmatmul.bf16.gmra.mxu2 %v461_v3  ;;  %v441_v7 = vmax.f32 %v423_v5, 0.0 }
 0x154   : > { %v397_v4 = vpop.f32.mrf.mxu1 }
 0x155   : > { %v398_v9 = vadd.f32 %v397_v4, %v329_v46 }
 0x157   : > { %v431_v14 = vmax.f32 %v398_v9, 0.0 }
 0x158   : > { %v424_v6 = vpop.f32.mrf.mxu3 }
 0x159   : > { %v425_v8 = vadd.f32 %v424_v6, %v329_v46 }
 0x15b   : > { %v442_v10 = vmax.f32 %v425_v8, 0.0 }
 0x15c   : > { %v399_v11 = vpop.f32.mrf.mxu1 }
 0x15d   : > { %v400_v12 = vadd.f32 %v399_v11, %v329_v46  ;;  %v467_v13 = vpack.c.bf16 %v442_v10, %v441_v7 }
 0x15f   : > { %v432_v15 = vmax.f32 %v400_v12, 0.0  ;;  %561 = vmatmul.bf16.gmra.mxu3 %v467_v13 }
 0x161   : > { %v462_v16 = vpack.c.bf16 %v432_v15, %v431_v14 }
 0x163   : > { %536 = vmatmul.bf16.gmra.mxu2 %v462_v16 }
 0x164   : > { %v402_v17 = vpop.f32.mrf.mxu1 }
 0x165   : > { %v403_v18 = vadd.f32 %v402_v17, %v329_v46 }
 0x167   : > { %v433_v21 = vmax.f32 %v403_v18, 0.0 }
 0x16c   : > { %v404_v19 = vpop.f32.mrf.mxu1 }
 0x16d   : > { %v405_v20 = vadd.f32 %v404_v19, %v329_v46 }
 0x16f   : > { %v434_v22 = vmax.f32 %v405_v20, 0.0 }
 0x171   : > { %v463_v23 = vpack.c.bf16 %v434_v22, %v433_v21 }
 0x173   : > { %541 = vmatmul.bf16.gmra.mxu2 %v463_v23 }
 0x174   : > { %v407_v24 = vpop.f32.mrf.mxu1 }
 0x175   : > { %v408_v25 = vadd.f32 %v407_v24, %v329_v46 }
 0x177   : > { %v435_v28 = vmax.f32 %v408_v25, 0.0 }
 0x17c   : > { %v409_v26 = vpop.f32.mrf.mxu1 }
 0x17d   : > { %v410_v27 = vadd.f32 %v409_v26, %v329_v46 }
 0x17f   : > { %v436_v29 = vmax.f32 %v410_v27, 0.0 }
 0x181   : > { %v464_v30 = vpack.c.bf16 %v436_v29, %v435_v28 }
 0x183   : > { %546 = vmatmul.bf16.gmra.mxu2 %v464_v30 }
 0x184   : > { %v412_v31 = vpop.f32.mrf.mxu1 }
 0x185   : > { %v413_v32 = vadd.f32 %v412_v31, %v329_v46 }
 0x187   : > { %v437_v35 = vmax.f32 %v413_v32, 0.0 }
 0x18c   : > { %v414_v33 = vpop.f32.mrf.mxu1 }
 0x18d   : > { %v415_v34 = vadd.f32 %v414_v33, %v329_v46 }
 0x18f   : > { %v438_v36 = vmax.f32 %v415_v34, 0.0 }
 0x191   : > { %v465_v37 = vpack.c.bf16 %v438_v36, %v437_v35 }
 0x193   : > { %551 = vmatmul.bf16.gmra.mxu2 %v465_v37 }
 0x1c6   : > { %v527_v41 = vpop.f32.mrf.mxu2 }
 0x1c7   : > { %v528_v42 = vadd.f32 %v527_v41, %v469_v40 }
 0x1c9   : > { %567 = vst [vmem:[%s963_s21] sm:$0xff] %v528_v42 }
 0x1ce   : > { %v529_v43 = vpop.f32.mrf.mxu2 }
 0x1cf   : > { %v530_v44 = vadd.f32 %v529_v43, %v469_v40 }
 0x1d1   : > { %568 = vst [vmem:[%s963_s21 + $0x8] sm:$0xff] %v530_v44 }
 0x1d2   : > { %v557_v45 = vpop.f32.mrf.mxu3 }
 0x1d3   : > { %v558_v46 = vadd.f32 %v557_v45, %v469_v40 }
 0x1d5   : > { %579 = vst [vmem:[%s963_s21 + $0x60] sm:$0xff] %v558_v46 }
 0x1d6   : > { %v532_v47 = vpop.f32.mrf.mxu2 }
 0x1d7   : > { %v533_v48 = vadd.f32 %v532_v47, %v469_v40 }
 0x1d9   : > { %569 = vst [vmem:[%s963_s21 + $0x10] sm:$0xff] %v533_v48 }
 0x1da   : > { %v559_v49 = vpop.f32.mrf.mxu3 }
 0x1db   : > { %v560_v50 = vadd.f32 %v559_v49, %v469_v40 }
 0x1dd   : > { %580 = vst [vmem:[%s963_s21 + $0x68] sm:$0xff] %v560_v50 }
 0x1de   : > { %v534_v51 = vpop.f32.mrf.mxu2 }
 0x1df   : > { %v535_v52 = vadd.f32 %v534_v51, %v469_v40 }
 0x1e1   : > { %570 = vst [vmem:[%s963_s21 + $0x18] sm:$0xff] %v535_v52 }
 0x1e2   : > { %v562_v53 = vpop.f32.mrf.mxu3 }
 0x1e3   : > { %v563_v54 = vadd.f32 %v562_v53, %v469_v40 }
 0x1e5   : > { %581 = vst [vmem:[%s963_s21 + $0x70] sm:$0xff] %v563_v54 }
 0x1e6   : > { %v537_v55 = vpop.f32.mrf.mxu2 }
 0x1e7   : > { %v538_v56 = vadd.f32 %v537_v55, %v469_v40 }
 0x1e9   : > { %571 = vst [vmem:[%s963_s21 + $0x20] sm:$0xff] %v538_v56 }
 0x1ea   : > { %v564_v57 = vpop.f32.mrf.mxu3 }
 0x1eb   : > { %v565_v58 = vadd.f32 %v564_v57, %v469_v40 }
 0x1ed   : > { %582 = vst [vmem:[%s963_s21 + $0x78] sm:$0xff] %v565_v58 }
 0x1ee   : > { %v539_v59 = vpop.f32.mrf.mxu2 }
 0x1ef   : > { %v540_v60 = vadd.f32 %v539_v59, %v469_v40 }
 0x1f1   : > { %572 = vst [vmem:[%s963_s21 + $0x28] sm:$0xff] %v540_v60 }
 0x1f6   : > { %v542_v61 = vpop.f32.mrf.mxu2 }
 0x1f7   : > { %v543_v62 = vadd.f32 %v542_v61, %v469_v40 }
 0x1f9   : > { %573 = vst [vmem:[%s963_s21 + $0x30] sm:$0xff] %v543_v62 }
 0x1fe   : > { %v544_v63 = vpop.f32.mrf.mxu2 }
 0x1ff   : > { %v545_v0 = vadd.f32 %v544_v63, %v469_v40 }
 0x201   : > { %574 = vst [vmem:[%s963_s21 + $0x38] sm:$0xff] %v545_v0 }
 0x206   : > { %v547_v1 = vpop.f32.mrf.mxu2 }
 0x207   : > { %v548_v2 = vadd.f32 %v547_v1, %v469_v40 }
 0x209   : > { %575 = vst [vmem:[%s963_s21 + $0x40] sm:$0xff] %v548_v2 }
 0x20e   : > { %v549_v3 = vpop.f32.mrf.mxu2 }
 0x20f   : > { %v550_v4 = vadd.f32 %v549_v3, %v469_v40 }
 0x211   : > { %576 = vst [vmem:[%s963_s21 + $0x48] sm:$0xff] %v550_v4 }
 0x216   : > { %v552_v5 = vpop.f32.mrf.mxu2 }
 0x217   : > { %v553_v6 = vadd.f32 %v552_v5, %v469_v40 }
 0x219   : > { %577 = vst [vmem:[%s963_s21 + $0x50] sm:$0xff] %v553_v6 }
 0x21e   : > { %v554_v7 = vpop.f32.mrf.mxu2 }
 0x21f   : > { %v555_v8 = vadd.f32 %v554_v7, %v469_v40 }
 0x221   : > { %578 = vst [vmem:[%s963_s21 + $0x58] sm:$0xff] %v555_v8 }
 0x222 PF: > { %s12_s9 = sadd.s32 1, %s808_s9  }
 0x223   : > { %p9_p4 = scmp.ge.s32.totalorder %s12_s9, 4  }
 0x225   :  { %11 = sbr.rel (!%p9_p4) target bundleno = 1 (0x1), region = 58 }

</bundles_post_ra>
